<compile_context>
chip_gen: v6e
topology: v6e:2x2x1
jax: 0.10.0
libtpu: 0.0.40
codegen_flags: <defaults>
</compile_context>

<pallas_src>
import jax
import jax.numpy as jnp
from jax.experimental import pallas as pl
from jax.experimental.pallas import tpu as pltpu

_LANE = 128


def _min_sublane(dtype):
    itemsize = jnp.dtype(dtype).itemsize
    return {4: 8, 2: 16, 1: 32}.get(itemsize, 8)


def _round_up(x, m):
    return ((x + m - 1) // m) * m


def _linear_kernel(x_ref, w_ref, b_ref, o_ref):
    # One MXU pass per batch tile: (TB, K) @ (K, N) with f32 accumulation.
    acc = jnp.dot(x_ref[...], w_ref[...], preferred_element_type=jnp.float32)
    o_ref[...] = (acc + b_ref[...].astype(jnp.float32)).astype(o_ref.dtype)


def prepare_timestep_embedder_params(w, b, *, compute_dtype=None):
    """One-time parameter prep (do NOT repeat per forward call).

    - transposes the PyTorch weight (d_model, in_feats) -> (in_feats, d_model)
    - pads d_model up to a multiple of 128 so output stores are lane-dense
    - optionally casts W to `compute_dtype` (e.g. bf16) ONCE here, instead of
      a per-call wrapper cast.  Bias stays f32 (added in f32 in-kernel; tiny).
    Returns (w_t, b2d, d_model).
    """
    d_model, in_feats = w.shape
    w_t = jnp.transpose(w)                                  # (in_feats, d_model)
    b2d = jnp.reshape(b, (1, d_model)).astype(jnp.float32)  # (1, d_model)
    n_pad = _round_up(d_model, _LANE)
    if n_pad != d_model:
        w_t = jnp.pad(w_t, ((0, 0), (0, n_pad - d_model)))
        b2d = jnp.pad(b2d, ((0, 0), (0, n_pad - d_model)))
    if compute_dtype is not None:
        w_t = w_t.astype(compute_dtype)
    return w_t, b2d, d_model


def timestep_embedder(x, w_t, b, d_model, *, block_b=1024, out_dtype=None,
                      vmem_budget_bytes=12 << 20):
    """TimeStepEmbedder forward: y = x @ W.T + b.

    Args:
      x:       (B, in_feats) activations.
      w_t:     (in_feats, N_pad) weight from prepare_timestep_embedder_params.
      b:       (1, N_pad) f32 bias from prepare_timestep_embedder_params.
      d_model: logical output width (<= N_pad); output is sliced back to it.
      block_b: max batch tile (final tile is VMEM-budget and >=2-tile capped).
      out_dtype: output dtype (default: x.dtype); bf16 halves y writeback.
      vmem_budget_bytes: per-call VMEM budget used to size the batch tile.
    """
    B, in_feats = x.shape
    n_pad = w_t.shape[1]
    out_dtype = x.dtype if out_dtype is None else out_dtype

    # Match x to the (pre-converted) weight dtype; x is K-narrow so this cast
    # is cheap — the expensive per-call W cast was removed (done once at prep).
    if x.dtype != w_t.dtype:
        x = x.astype(w_t.dtype)

    x_b = jnp.dtype(x.dtype).itemsize
    w_b = jnp.dtype(w_t.dtype).itemsize
    o_b = jnp.dtype(out_dtype).itemsize
    sublane = max(_min_sublane(x.dtype), _min_sublane(out_dtype))

    cost = pl.CostEstimate(
        flops=2 * B * in_feats * n_pad,
        transcendentals=0,
        bytes_accessed=(B * in_feats * x_b + in_feats * n_pad * w_b
                       + n_pad * 4 + B * n_pad * o_b),
    )

    def _maybe_slice(y):
        return y[:, :d_model] if d_model != n_pad else y

    # ---- tiny-batch single-shot path: no grid, no pipeline overhead -------
    if B <= 2 * sublane:
        y = pl.pallas_call(
            _linear_kernel,
            out_shape=jax.ShapeDtypeStruct((B, n_pad), out_dtype),
            in_specs=[
                pl.BlockSpec(memory_space=pltpu.MemorySpace.VMEM),
                pl.BlockSpec(memory_space=pltpu.MemorySpace.VMEM),
                pl.BlockSpec(memory_space=pltpu.MemorySpace.VMEM),
            ],
            out_specs=pl.BlockSpec(memory_space=pltpu.MemorySpace.VMEM),
            cost_estimate=cost,
        )(x, w_t, b)
        return _maybe_slice(y)

    # ---- tiled path: grid over batch only, W/b resident (single-buffered) --
    # VMEM per step: 2*tb*K (x, double-buffered) + 2*tb*N (out, double-
    # buffered) + K*N (W, 1 buffer) + N*4 (b, 1 buffer).
    resident = in_feats * n_pad * w_b + n_pad * 4
    per_row = 2 * in_feats * x_b + 2 * n_pad * o_b
    tb_budget = max(sublane, (vmem_budget_bytes - resident) // per_row)
    tb = min(block_b, tb_budget)
    # Guarantee at least 2 batch tiles so the "parallel" axis can split across
    # v7x's two TensorCores (near-neutral on single-TC v5e/v6e).
    tb = min(tb, max(sublane, _round_up(-(-B // 2), sublane)))
    tb = max(sublane, (tb // sublane) * sublane)

    grid = (pl.cdiv(B, tb),)
    y = pl.pallas_call(
        _linear_kernel,
        out_shape=jax.ShapeDtypeStruct((B, n_pad), out_dtype),
        grid_spec=pl.GridSpec(
            grid=grid,
            in_specs=[
                pl.BlockSpec((tb, in_feats), lambda i: (i, 0)),
                pl.BlockSpec((in_feats, n_pad), lambda i: (0, 0),
                             pipeline_mode=pl.Buffered(1)),   # resident weight
                pl.BlockSpec((1, n_pad), lambda i: (0, 0),
                             pipeline_mode=pl.Buffered(1)),   # resident bias
            ],
            out_specs=pl.BlockSpec((tb, n_pad), lambda i: (i, 0)),
        ),
        compiler_params=pltpu.CompilerParams(
            dimension_semantics=("parallel",),
            vmem_limit_bytes=int(vmem_budget_bytes + (4 << 20)),
        ),
        cost_estimate=cost,
    )(x, w_t, b)
    return _maybe_slice(y)


if __name__ == "__main__":
    # Small shapes consistent with the module: batch=8, in_feats=16, d_model=32.
    B, in_feats, d_model = 8, 16, 32

    key = jax.random.PRNGKey(0)
    kx, kw, kb = jax.random.split(key, 3)
    x = jax.random.normal(kx, (B, in_feats), dtype=jnp.float32)

    # nn.Linear default init: uniform(-1/sqrt(in_feats), 1/sqrt(in_feats)).
    bound = 1.0 / (in_feats ** 0.5)
    w = jax.random.uniform(kw, (d_model, in_feats), jnp.float32, -bound, bound)
    b = jax.random.uniform(kb, (d_model,), jnp.float32, -bound, bound)

    ref = x @ w.T + b

    # 1) f32 params (prepared once; d_model lane-padded internally) — exact.
    w_t, b2d, dm = prepare_timestep_embedder_params(w, b)
    out = jax.block_until_ready(timestep_embedder(x, w_t, b2d, dm))
    assert out.shape == (B, d_model)
    assert jnp.allclose(out, ref, atol=1e-5, rtol=1e-5)

    # 2) bf16 compute path: weight pre-converted ONCE, f32 accumulate in-kernel.
    w_t16, b2d16, _ = prepare_timestep_embedder_params(
        w, b, compute_dtype=jnp.bfloat16)
    out16 = jax.block_until_ready(timestep_embedder(x, w_t16, b2d16, dm))
    assert out16.shape == (B, d_model)
    assert jnp.allclose(out16, ref, atol=5e-2, rtol=5e-2)

    # 3) Tiled path: grid over B, resident single-buffered W/b, "parallel" axis.
    B2 = 64
    x2 = jax.random.normal(jax.random.PRNGKey(1), (B2, in_feats), jnp.float32)
    ref2 = x2 @ w.T + b
    out2 = jax.block_until_ready(timestep_embedder(x2, w_t, b2d, dm))
    assert out2.shape == (B2, d_model)
    assert jnp.allclose(out2, ref2, atol=1e-5, rtol=1e-5)

    # 4) Non-divisible batch (partial last tile) + bf16 output writeback.
    B3 = 72
    x3 = jax.random.normal(jax.random.PRNGKey(2), (B3, in_feats), jnp.float32)
    ref3 = x3 @ w.T + b
    out3 = jax.block_until_ready(
        timestep_embedder(x3, w_t, b2d, dm, out_dtype=jnp.bfloat16))
    assert out3.shape == (B3, d_model)
    assert out3.dtype == jnp.bfloat16
    assert jnp.allclose(out3.astype(jnp.float32), ref3, atol=5e-2, rtol=5e-2)

    print("KERNEL_OK")
</pallas_src>

<mosaic_0001>
module attributes {stable_mosaic.version = 11 : i64} {
  func.func @_linear_kernel(%arg0: memref<8x16xf32, #tpu.memory_space<vmem>>, %arg1: memref<16x128xf32, #tpu.memory_space<vmem>>, %arg2: memref<1x128xf32, #tpu.memory_space<vmem>>, %arg3: memref<8x128xf32, #tpu.memory_space<vmem>>) attributes {dimension_semantics = [], scalar_prefetch = 0 : i64, scratch_operands = 0 : i64, tpu.core_type = #tpu.core_type<tc>} {
    %c0 = arith.constant 0 : index
    %c0_0 = arith.constant 0 : index
    %0 = vector.load %arg0[%c0, %c0_0] : memref<8x16xf32, #tpu.memory_space<vmem>>, vector<8x16xf32>
    %c0_1 = arith.constant 0 : index
    %c0_2 = arith.constant 0 : index
    %1 = vector.load %arg1[%c0_1, %c0_2] : memref<16x128xf32, #tpu.memory_space<vmem>>, vector<16x128xf32>
    %cst = arith.constant dense<0.000000e+00> : vector<8x128xf32>
    %2 = tpu.matmul %0, %1, %cst {dimension_numbers = #tpu.dot_dimension_numbers<[1], [0], [0], [1], [0, 0, 1, 1], [], []>} : vector<8x16xf32>, vector<16x128xf32>, vector<8x128xf32> -> vector<8x128xf32>
    %c0_3 = arith.constant 0 : index
    %c0_4 = arith.constant 0 : index
    %3 = vector.load %arg2[%c0_3, %c0_4] : memref<1x128xf32, #tpu.memory_space<vmem>>, vector<1x128xf32>
    %4 = vector.broadcast %3 : vector<1x128xf32> to vector<8x128xf32>
    %5 = arith.addf %2, %4 : vector<8x128xf32>
    %c0_5 = arith.constant 0 : index
    %c0_6 = arith.constant 0 : index
    %6 = vector.load %arg3[%c0_5, %c0_6] : memref<8x128xf32, #tpu.memory_space<vmem>>, vector<8x128xf32>
    tpu.vector_store %arg3[%c0_5, %c0_6], %5 {strides = array<i32>} : memref<8x128xf32, #tpu.memory_space<vmem>>, vector<8x128xf32>,
    return
  }
}

</mosaic_0001>

<bundles_post_ra>
// kernel: tpu_custom_call.1
= control target key start
LH: loop header
LB: loop body
LE: loop exit
PB: predicated region body
PF: predicated region fallthrough
CT: control target
= control target key end

     0   :  { %8 = vsyncpa [#allocation3], 0  ;;  %s266_s0 = inlined_call_operand.hbm [shape: f32[8,16], index: 0, kind: input, shape index: {}]   ;;  %s267_s1 = inlined_call_operand.hbm [shape: f32[16,128], index: 1, kind: input, shape index: {}]   ;;  %s268_s2 = inlined_call_operand.vmem [shape: f32[1,128], index: 2, kind: input, shape index: {}]   ;;  %s269_s3 = inlined_call_operand.hbm [shape: f32[8,128], index: 3, kind: output, shape index: {}]  }
   0x1   :  { %9 = vsyncpa [#allocation6], 0 }
   0x2   :  { %10 = vsyncpa [#allocation4], 0  ;;  %s227_s12 = smov [#allocation2]   ;;  %s228_s14 = smov [#allocation5]  }
   0x3   :  { %s17_s13 = sshll.u32 %s227_s12, 4  ;;  %s26_s15 = sshll.u32 %s228_s14, 4  ;;  %s18_s13 = int_to_ptr.vmem [resolvable:$true] %s17_s13  ;;  %s27_s15 = int_to_ptr.vmem [resolvable:$true] %s26_s15 }
   0x4   :  { %s169_s16 = scalar_lea.vmem %s18_s13, 128  ;;  %p174_p1 = scmp.lt.s32.totalorder %s18_s13, %s18_s13 }
   0x5   :  { %p170_p0 = scmp.ne.s32.totalorder %s18_s13, %s169_s16  ;;  %p175_p2 = scmp.lt.s32.totalorder %s169_s16, %s169_s16 }
   0x7   :  { %p176_p3 = por %p175_p2, %p174_p1 }
   0x9   :  { %p177_p4 = pnand %p176_p3, %p170_p0 }
   0xb   :  { %180 = shalt.err (!%p177_p4)
}
   0xc   :  { %20 = dma.hbm_to_vmem [thread:$0]  %s266_s0, 128, %s18_s13, [#allocation3]  }
   0xd   :  { %s189_s19 = scalar_lea.vmem %s27_s15, 256  ;;  %p194_p6 = scmp.lt.s32.totalorder %s27_s15, %s27_s15 }
   0xe   :  { %p190_p5 = scmp.ne.s32.totalorder %s27_s15, %s189_s19  ;;  %p195_p7 = scmp.lt.s32.totalorder %s189_s19, %s189_s19 }
  0x10   :  { %p196_p8 = por %p195_p7, %p194_p6 }
  0x12   :  { %p197_p9 = pnand %p196_p8, %p190_p5 }
  0x14   :  { %200 = shalt.err (!%p197_p9)
}
  0x15   :  { %s229_s20 = smov 128   ;;  %s230_s21 = smov 8  }
  0x16   :  { %32 = dma.hbm_to_vmem [thread:$0]  %s267_s1, 256, %s27_s15, [#allocation6], %s229_s20, %s229_s20, %s230_s21  }
  0x17   :  { %221 = dma.done.wait [#allocation3], 128  }
  0x18   :  { %222 = vsyncadd [#allocation3], 4294967168 }
  0x19   :  { %223 = dma.done.wait [#allocation6], 256  }
  0x1a   :  { %224 = vsyncadd [#allocation6], 4294967040  ;;  %v231_v0 = vmov 0.0   ;;  %vm232_vm0 = vmmov 0   ;;  %v43_v1 = vld [vmem:[#allocation5 + $0x8] sm:$0xff]  ;;  %v42_v2 = vld [vmem:[#allocation5] sm:$0xff] }
  0x1b   :  { %147 = vmatprep.subr.mxu0 %v231_v0  ;;  %151 = vmatprep.mubr.msk.f32.mxu0 %vm232_vm0, %v231_v0  ;;  %v41_v3 = vld [vmem:[#allocation2] sm:$0xff]  ;;  %vm51_vm1 = vcmask 130048   ;;  %s233_s1 = smov [#allocation7]  }
  0x1c   :  { %148 = vmatpush3.msra.mxu0 %v43_v1  ;;  %v142_v4 = vld [vmem:[%s268_s2] ss:$0 sm:$0xff]  ;;  %s132_s25 = sshll.u32 %s233_s1, 4  ;;  %s133_s25 = int_to_ptr.vmem [resolvable:$true] %s132_s25 }
  0x1d   :  { %149 = vmatprep.subr.mxu0 %v231_v0  ;;  %s201_s26 = scalar_lea.vmem %s133_s25, 128  ;;  %p206_p11 = scmp.lt.s32.totalorder %s133_s25, %s133_s25 }
  0x1e   :  { %150 = vmatpush3.msra.mxu0 %v42_v2  ;;  %p202_p10 = scmp.ne.s32.totalorder %s133_s25, %s201_s26  ;;  %p207_p12 = scmp.lt.s32.totalorder %s201_s26, %s201_s26 }
  0x1f   :  { %152 = vmatmul.mubr.msk.f32.vlgmr.msra.gmra.mxu0 %vm51_vm1, %v41_v3 }
  0x20   :  { %p208_p13 = por %p207_p12, %p206_p11 }
  0x22   :  { %p209_p0 = pnand %p208_p13, %p202_p10 }
  0xdf   :  { %v121_v5 = vpop.f32.mrf.mxu0 }
  0xe0   :  { %v122_v6 = vadd.f32 %v142_v4, %v121_v5 }
  0xe1   :  { %v153_v7 = vpop.f32.mrf.mxu0 }
  0xe2   :  { %125 = vst [vmem:[#allocation7] sm:$0xff] %v122_v6 }
  0xe3   :  { %212 = shalt.err (!%p209_p0)
}
  0xe4   :  { %135 = dma.vmem_to_hbm [thread:$0]  %s133_s25, 128, %s269_s3, [#allocation4]  }
  0xe5   :  { %225 = dma.done.wait [#allocation4], 128  }
  0xe6   :  { %226 = vsyncadd [#allocation4], 4294967168 }
  0xe7   :  { %139 = vsyncpa [#allocation3], 1 }
  0xe8   :  { %140 = vsyncpa [#allocation6], 1 }
  0xe9   :  { %141 = vsyncpa [#allocation4], 1 }

</bundles_post_ra>
